<compile_context>
chip_gen: v6e
topology: v6e:2x2x1
jax: 0.10.0
libtpu: 0.0.40
codegen_flags: <defaults>
</compile_context>

<pallas_src>
import functools
import math

import jax
import jax.numpy as jnp
from jax.experimental import pallas as pl
from jax.experimental.pallas import tpu as pltpu

_LANE = 128
_SUBLANE = 8


def _round_up(x, m):
    return ((x + m - 1) // m) * m


# ----------------------------------------------------------------------------
# Kernel
# ----------------------------------------------------------------------------
def _fcomb_kernel(n_rest, num_classes, *refs):
    """Per-tile pixelwise MLP (stack of 1x1 convs).

    refs (n_rest > 0):  feat, zbias, w0, restw, restb, out
    refs (n_rest == 0): feat, zbias, w0, out

    feat  : (1, C_feat, tile)      pixels on lanes, input dtype
    zbias : (1, Cp, 1)             per-batch  z @ W1_z + b1  (f32, padded)
    w0    : (Cp, C_feat)           layer-0 W^T, zero-padded rows
    restw : (n_rest, Cp, Cp)       layer i>=1 W^T, zero-padded
    restb : (n_rest, Cp, 1)        layer i>=1 bias columns, zero-padded
    out   : (1, num_classes, tile)
    """
    if n_rest:
        feat_ref, zbias_ref, w0_ref, restw_ref, restb_ref, out_ref = refs
    else:
        feat_ref, zbias_ref, w0_ref, out_ref = refs

    # Load in streaming dtype, compute in f32 (elementwise stays f32 on v5e too).
    h = feat_ref[0].astype(jnp.float32)                                   # (C_feat, tile)

    # Layer 0: feature-map part of conv1; z-term + bias broadcast over lanes.
    h = jnp.dot(w0_ref[...], h,
                preferred_element_type=jnp.float32,
                precision=jax.lax.Precision.HIGHEST)                      # (Cp, tile)
    h = h + zbias_ref[0]

    # Layers 1..n-1: ReLU then 1x1 conv.  Zero-padded rows/cols stay exactly 0.
    for li in range(n_rest):
        h = jnp.maximum(h, 0.0)
        h = jnp.dot(restw_ref[li], h,
                    preferred_element_type=jnp.float32,
                    precision=jax.lax.Precision.HIGHEST) + restb_ref[li]

    out_ref[0] = h[:num_classes].astype(out_ref.dtype)


# ----------------------------------------------------------------------------
# Tile selection (generation-aware bytes-per-step target)
# ----------------------------------------------------------------------------
def _select_tile(HW, B, bytes_per_pixel, target_step_bytes, max_tile_pixels):
    tile = int(target_step_bytes) // max(int(bytes_per_pixel), 1)
    tile = max(_LANE, min(tile, max_tile_pixels))
    tile = _round_up(tile, _LANE)
    if tile >= HW:
        tile, n_tiles = HW, 1              # full-extent block (always legal)
    else:
        n_tiles = -(-HW // tile)           # partial last block is masked
    # Make sure both TensorCores (v7x) have work even at batch 1.
    if B * n_tiles < 2 and HW >= 2 * _LANE:
        tile = _round_up(-(-HW // 2), _LANE)
        n_tiles = -(-HW // tile)
    return tile, n_tiles


# ----------------------------------------------------------------------------
# One-time parameter packing (hoist out of the per-call path)
# ----------------------------------------------------------------------------
def pack_fcomb_params(params, dtype=jnp.float32):
    """params = [(w1_f, w1_z, b1), (w2, b2), ..., (w_last, b_last)].

    Weights are (C_in, C_out), biases (1, C_out).  Returns (packed_dict,
    num_classes) where every weight is W^T zero-padded to one fixed,
    sublane-aligned channel width Cp (padding is a mathematical no-op).
    """
    w1f, w1z, b1 = params[0]
    c_feat, c0_out = w1f.shape
    rest = list(params[1:])
    out_dims = [c0_out] + [w.shape[1] for (w, _) in rest]
    cp = _round_up(max(out_dims), _SUBLANE)

    w0 = jnp.zeros((cp, c_feat), dtype).at[:c0_out, :].set(w1f.T.astype(dtype))
    w1z_p = jnp.zeros((w1z.shape[0], cp), dtype).at[:, :c0_out].set(w1z.astype(dtype))
    b1_p = jnp.zeros((cp,), dtype).at[:c0_out].set(b1.reshape(-1).astype(dtype))

    n_rest = len(rest)
    restw = jnp.zeros((max(n_rest, 1), cp, cp), dtype)
    restb = jnp.zeros((max(n_rest, 1), cp, 1), dtype)
    for li, (wi, bi) in enumerate(rest):
        ci, co = wi.shape
        restw = restw.at[li, :co, :ci].set(wi.T.astype(dtype))
        restb = restb.at[li, :co, 0].set(bi.reshape(-1).astype(dtype))
    if n_rest == 0:
        restw = restw[:0]
        restb = restb[:0]

    packed = dict(w0=w0, w1z=w1z_p, b1=b1_p, restw=restw, restb=restb)
    return packed, out_dims[-1]


# ----------------------------------------------------------------------------
# Forward
# ----------------------------------------------------------------------------
def fcomb_forward(feature_map, z, packed, *, num_classes,
                  target_step_bytes=2 << 20, max_tile_pixels=32768):
    """feature_map: NCHW (B, C_feat, H, W); z: (B, latent_dim).

    Streams activations in feature_map.dtype (pass bf16 to halve HBM traffic);
    all in-kernel elementwise math is f32.
    """
    B, C_feat, H, W = feature_map.shape
    HW = H * W

    w0, w1z, b1 = packed["w0"], packed["w1z"], packed["b1"]
    restw, restb = packed["restw"], packed["restb"]
    cp = w0.shape[0]
    n_rest = restw.shape[0]

    # Views only — no pad, no astype, no transpose on the big tensor.
    feat = feature_map.reshape(B, C_feat, HW)

    # Per-batch z-term of layer 0, padded to Cp channels (tiny; fuses under jit).
    zbias = (z.astype(jnp.float32) @ w1z.astype(jnp.float32)
             + b1.astype(jnp.float32)).reshape(B, cp, 1)

    itemsize = jnp.dtype(feature_map.dtype).itemsize
    bytes_per_pixel = (C_feat + num_classes) * itemsize
    tile, n_tiles = _select_tile(HW, B, bytes_per_pixel,
                                 target_step_bytes, max_tile_pixels)

    in_specs = [
        pl.BlockSpec((1, C_feat, tile), lambda b, t: (b, 0, t)),   # streamed
        pl.BlockSpec((1, cp, 1), lambda b, t: (b, 0, 0)),          # per-batch
        pl.BlockSpec((cp, C_feat), lambda b, t: (0, 0)),           # resident
    ]
    args = [feat, zbias, w0]
    if n_rest:
        in_specs += [
            pl.BlockSpec((n_rest, cp, cp), lambda b, t: (0, 0, 0)),
            pl.BlockSpec((n_rest, cp, 1), lambda b, t: (0, 0, 0)),
        ]
        args += [restw, restb]

    out = pl.pallas_call(
        functools.partial(_fcomb_kernel, n_rest, num_classes),
        out_shape=jax.ShapeDtypeStruct((B, num_classes, HW), feature_map.dtype),
        grid_spec=pltpu.PrefetchScalarGridSpec(
            num_scalar_prefetch=0,
            grid=(B, n_tiles),
            in_specs=in_specs,
            out_specs=pl.BlockSpec((1, num_classes, tile), lambda b, t: (b, 0, t)),
        ),
        compiler_params=pltpu.CompilerParams(
            dimension_semantics=("parallel", "parallel"),
            vmem_limit_bytes=32 * 1024 * 1024),
    )(*args)

    # Already channel-major and exactly HW wide — metadata reshape only.
    return out.reshape(B, num_classes, H, W)


# ----------------------------------------------------------------------------
# Init + pure-JAX reference
# ----------------------------------------------------------------------------
def init_fcomb_params(key, latent_dim, unet_output_channels, num_classes,
                      no_fcomb_layers):
    """Deterministic init mimicking PyTorch Conv2d default (U(+-1/sqrt(fan_in)))."""
    filters = latent_dim + unet_output_channels
    params = []
    dims = [filters] * (no_fcomb_layers - 1) + [num_classes]
    in_dim = filters
    for li, out_dim in enumerate(dims):
        key, kw, kb = jax.random.split(key, 3)
        bound = 1.0 / jnp.sqrt(in_dim)
        w = jax.random.uniform(kw, (in_dim, out_dim), jnp.float32, -bound, bound)
        b = jax.random.uniform(kb, (1, out_dim), jnp.float32, -bound, bound)
        if li == 0:
            params.append((w[:unet_output_channels], w[unet_output_channels:], b))
        else:
            params.append((w, b))
        in_dim = out_dim
    return params


def ref_fcomb(feature_map, z, params):
    """Pure-JAX reference of the PyTorch forward (broadcast z, concat, 1x1 convs)."""
    B, C, H, W = feature_map.shape
    latent = z.shape[1]
    zb = jnp.broadcast_to(z[:, :, None, None], (B, latent, H, W))
    x = jnp.concatenate([feature_map, zb], axis=1)
    x = jnp.transpose(x, (0, 2, 3, 1)).reshape(-1, C + latent)
    w1f, w1z, b1 = params[0]
    w1 = jnp.concatenate([w1f, w1z], axis=0)
    h = jnp.maximum(x @ w1 + b1, 0.0)
    for (wi, bi) in params[1:-1]:
        h = jnp.maximum(h @ wi + bi, 0.0)
    w_last, b_last = params[-1]
    out = h @ w_last + b_last
    nc = w_last.shape[1]
    return jnp.transpose(out.reshape(B, H, W, nc), (0, 3, 1, 2))


if __name__ == "__main__":
    # Small, deterministic config consistent with the module.
    B, H, W = 2, 16, 16
    latent_dim = 6
    unet_output_channels = 10
    num_classes = 4
    no_fcomb_layers = 3

    key = jax.random.PRNGKey(0)
    k_feat, k_z, k_par = jax.random.split(key, 3)
    feature_map = jax.random.normal(
        k_feat, (B, unet_output_channels, H, W), jnp.float32)
    z = jax.random.normal(k_z, (B, latent_dim), jnp.float32)
    params = init_fcomb_params(k_par, latent_dim, unet_output_channels,
                               num_classes, no_fcomb_layers)

    # Pack once (hoisted out of the call path), jit the forward.
    packed, nc_packed = pack_fcomb_params(params)
    fwd = jax.jit(functools.partial(fcomb_forward, num_classes=nc_packed))

    out = fwd(feature_map, z, packed)
    out = jax.block_until_ready(out)

    expected = ref_fcomb(feature_map, z, params)
    assert out.shape == (B, num_classes, H, W), out.shape
    assert jnp.allclose(out, expected, atol=1e-5, rtol=1e-5), \
        float(jnp.max(jnp.abs(out - expected)))

    print("KERNEL_OK")
</pallas_src>

<mosaic_0001>
module attributes {stable_mosaic.version = 11 : i64} {
  func.func @_fcomb_kernel(%arg0: i32, %arg1: i32, %arg2: memref<1x10x256xf32, #tpu.memory_space<vmem>>, %arg3: memref<1x16x1xf32, #tpu.memory_space<vmem>>, %arg4: memref<16x10xf32, #tpu.memory_space<vmem>>, %arg5: memref<2x16x16xf32, #tpu.memory_space<vmem>>, %arg6: memref<2x16x1xf32, #tpu.memory_space<vmem>>, %arg7: memref<1x4x256xf32, #tpu.memory_space<vmem>>) attributes {dimension_semantics = [#tpu.dimension_semantics<parallel>, #tpu.dimension_semantics<parallel>], iteration_bounds = array<i64: 2, 1>, scalar_prefetch = 0 : i64, scratch_operands = 0 : i64, tpu.core_type = #tpu.core_type<tc>, window_params = [{transform_indices = @transform_0, window_bounds = array<i64: 1, 10, 256>}, {transform_indices = @transform_1, window_bounds = array<i64: 1, 16, 1>}, {pipeline_mode = #tpu.pipeline_mode<synchronous>, transform_indices = @transform_2, window_bounds = array<i64: 16, 10>}, {pipeline_mode = #tpu.pipeline_mode<synchronous>, transform_indices = @transform_3, window_bounds = array<i64: 2, 16, 16>}, {pipeline_mode = #tpu.pipeline_mode<synchronous>, transform_indices = @transform_4, window_bounds = array<i64: 2, 16, 1>}, {transform_indices = @transform_5, window_bounds = array<i64: 1, 4, 256>}]} {
    %c0 = arith.constant 0 : index
    %c0_0 = arith.constant 0 : index
    %c0_1 = arith.constant 0 : index
    %0 = vector.load %arg2[%c0, %c0_0, %c0_1] : memref<1x10x256xf32, #tpu.memory_space<vmem>>, vector<1x10x256xf32>
    %1 = vector.shape_cast %0 : vector<1x10x256xf32> to vector<10x256xf32>
    %c0_2 = arith.constant 0 : index
    %c0_3 = arith.constant 0 : index
    %2 = vector.load %arg4[%c0_2, %c0_3] : memref<16x10xf32, #tpu.memory_space<vmem>>, vector<16x10xf32>
    %cst = arith.constant dense<0.000000e+00> : vector<16x256xf32>
    %3 = tpu.matmul %2, %1, %cst {dimension_numbers = #tpu.dot_dimension_numbers<[1], [0], [0], [1], [0, 0, 1, 1], [], []>, precision = #tpu.contract_precision<fp32>} : vector<16x10xf32>, vector<10x256xf32>, vector<16x256xf32> -> vector<16x256xf32>
    %c0_4 = arith.constant 0 : index
    %c0_5 = arith.constant 0 : index
    %c0_6 = arith.constant 0 : index
    %4 = vector.load %arg3[%c0_4, %c0_5, %c0_6] : memref<1x16x1xf32, #tpu.memory_space<vmem>>, vector<1x16x1xf32>
    %5 = vector.shape_cast %4 : vector<1x16x1xf32> to vector<16x1xf32>
    %6 = vector.broadcast %5 : vector<16x1xf32> to vector<16x256xf32>
    %7 = arith.addf %3, %6 : vector<16x256xf32>
    %cst_7 = arith.constant 0.000000e+00 : f32
    %8 = vector.broadcast %cst_7 : f32 to vector<16x256xf32>
    %9 = arith.maximumf %7, %8 : vector<16x256xf32>
    %c0_8 = arith.constant 0 : index
    %c0_9 = arith.constant 0 : index
    %c0_10 = arith.constant 0 : index
    %10 = vector.load %arg5[%c0_8, %c0_9, %c0_10] : memref<2x16x16xf32, #tpu.memory_space<vmem>>, vector<1x16x16xf32>
    %11 = vector.shape_cast %10 : vector<1x16x16xf32> to vector<16x16xf32>
    %cst_11 = arith.constant dense<0.000000e+00> : vector<16x256xf32>
    %12 = tpu.matmul %11, %9, %cst_11 {dimension_numbers = #tpu.dot_dimension_numbers<[1], [0], [0], [1], [0, 0, 1, 1], [], []>, precision = #tpu.contract_precision<fp32>} : vector<16x16xf32>, vector<16x256xf32>, vector<16x256xf32> -> vector<16x256xf32>
    %c0_12 = arith.constant 0 : index
    %c0_13 = arith.constant 0 : index
    %c0_14 = arith.constant 0 : index
    %13 = vector.load %arg6[%c0_12, %c0_13, %c0_14] : memref<2x16x1xf32, #tpu.memory_space<vmem>>, vector<1x16x1xf32>
    %14 = vector.shape_cast %13 : vector<1x16x1xf32> to vector<16x1xf32>
    %15 = vector.broadcast %14 : vector<16x1xf32> to vector<16x256xf32>
    %16 = arith.addf %12, %15 : vector<16x256xf32>
    %cst_15 = arith.constant 0.000000e+00 : f32
    %17 = vector.broadcast %cst_15 : f32 to vector<16x256xf32>
    %18 = arith.maximumf %16, %17 : vector<16x256xf32>
    %c1 = arith.constant 1 : index
    %c0_16 = arith.constant 0 : index
    %c0_17 = arith.constant 0 : index
    %19 = vector.load %arg5[%c1, %c0_16, %c0_17] : memref<2x16x16xf32, #tpu.memory_space<vmem>>, vector<1x16x16xf32>
    %20 = vector.shape_cast %19 : vector<1x16x16xf32> to vector<16x16xf32>
    %cst_18 = arith.constant dense<0.000000e+00> : vector<16x256xf32>
    %21 = tpu.matmul %20, %18, %cst_18 {dimension_numbers = #tpu.dot_dimension_numbers<[1], [0], [0], [1], [0, 0, 1, 1], [], []>, precision = #tpu.contract_precision<fp32>} : vector<16x16xf32>, vector<16x256xf32>, vector<16x256xf32> -> vector<16x256xf32>
    %c1_19 = arith.constant 1 : index
    %c0_20 = arith.constant 0 : index
    %c0_21 = arith.constant 0 : index
    %22 = vector.load %arg6[%c1_19, %c0_20, %c0_21] : memref<2x16x1xf32, #tpu.memory_space<vmem>>, vector<1x16x1xf32>
    %23 = vector.shape_cast %22 : vector<1x16x1xf32> to vector<16x1xf32>
    %24 = vector.broadcast %23 : vector<16x1xf32> to vector<16x256xf32>
    %25 = arith.addf %21, %24 : vector<16x256xf32>
    %26 = vector.extract_strided_slice %25 {offsets = [0, 0], sizes = [4, 256], strides = [1, 1]} : vector<16x256xf32> to vector<4x256xf32>
    %c0_22 = arith.constant 0 : index
    %c0_23 = arith.constant 0 : index
    %c0_24 = arith.constant 0 : index
    %27 = vector.load %arg7[%c0_22, %c0_23, %c0_24] : memref<1x4x256xf32, #tpu.memory_space<vmem>>, vector<1x4x256xf32>
    %28 = vector.shape_cast %27 : vector<1x4x256xf32> to vector<4x256xf32>
    %29 = vector.shape_cast %26 : vector<4x256xf32> to vector<1x4x256xf32>
    tpu.vector_store %arg7[%c0_22, %c0_23, %c0_24], %29 {strides = array<i32>} : memref<1x4x256xf32, #tpu.memory_space<vmem>>, vector<1x4x256xf32>,
    return
  }
  func.func @transform_0(%arg0: i32, %arg1: i32) -> (i32, i32, i32) {
    %c0_i32 = arith.constant 0 : i32
    %c0_i32_0 = arith.constant 0 : i32
    return %arg0, %c0_i32, %arg1 : i32, i32, i32
  }
  func.func @transform_1(%arg0: i32, %arg1: i32) -> (i32, i32, i32) {
    %c0_i32 = arith.constant 0 : i32
    %c0_i32_0 = arith.constant 0 : i32
    %c0_i32_1 = arith.constant 0 : i32
    return %arg0, %c0_i32, %c0_i32_0 : i32, i32, i32
  }
  func.func @transform_2(%arg0: i32, %arg1: i32) -> (i32, i32) {
    %c0_i32 = arith.constant 0 : i32
    %c0_i32_0 = arith.constant 0 : i32
    %c0_i32_1 = arith.constant 0 : i32
    return %c0_i32, %c0_i32_0 : i32, i32
  }
  func.func @transform_3(%arg0: i32, %arg1: i32) -> (i32, i32, i32) {
    %c0_i32 = arith.constant 0 : i32
    %c0_i32_0 = arith.constant 0 : i32
    %c0_i32_1 = arith.constant 0 : i32
    %c0_i32_2 = arith.constant 0 : i32
    return %c0_i32, %c0_i32_0, %c0_i32_1 : i32, i32, i32
  }
  func.func @transform_4(%arg0: i32, %arg1: i32) -> (i32, i32, i32) {
    %c0_i32 = arith.constant 0 : i32
    %c0_i32_0 = arith.constant 0 : i32
    %c0_i32_1 = arith.constant 0 : i32
    %c0_i32_2 = arith.constant 0 : i32
    return %c0_i32, %c0_i32_0, %c0_i32_1 : i32, i32, i32
  }
  func.func @transform_5(%arg0: i32, %arg1: i32) -> (i32, i32, i32) {
    %c0_i32 = arith.constant 0 : i32
    %c0_i32_0 = arith.constant 0 : i32
    return %arg0, %c0_i32, %arg1 : i32, i32, i32
  }
}

</mosaic_0001>

<bundles_post_ra>
// kernel: fcomb_forward.1
= control target key start
LH: loop header
LB: loop body
LE: loop exit
PB: predicated region body
PF: predicated region fallthrough
CT: control target
= control target key end

     0   :  { %s2182_s18 = smov 0   ;;  %s2184_s19 = smov 0   ;;  %s2402_s0 = inlined_call_operand.vmem [shape: f32[2,10,256], index: 0, kind: input, shape index: {}]   ;;  %s2403_s1 = inlined_call_operand.vmem [shape: f32[2,16,1], index: 1, kind: input, shape index: {}]   ;;  %s2404_s2 = inlined_call_operand.vmem [shape: f32[16,10], index: 2, kind: input, shape index: {}]   ;;  %s2405_s3 = inlined_call_operand.vmem [shape: f32[2,16,16], index: 3, kind: input, shape index: {}]   ;;  %s2406_s4 = inlined_call_operand.vmem [shape: f32[2,16,1], index: 4, kind: input, shape index: {}]   ;;  %s2407_s5 = inlined_call_operand.vmem [shape: f32[2,4,256], index: 5, kind: output, shape index: {}]  }
   0x1   :  { %s2186_s20 = smov 0  }
   0x2 LB: > { %s27_s21 = sadd.s32 1, %s2144_s19  ;;  %p2082_p0 = scmp.ge.s32.totalorder %s2148_s20, 1  ;;  %s2148_s20 = sphi %s2186_s20, %s15_s20   ;;  %s2144_s19 = sphi %s2184_s19, %s2409_s19   ;;  %s2140_s18 = sphi %s2182_s18, %s2408_s18  }
   0x3   : > { %p29_p1 = scmp.ge.s32.totalorder %s27_s21, 2  ;;  %p218_p2 = scmp.lt.s32.totalorder %s2148_s20, 3 }
   0x5   : > { %s2411_s21 = smov (%p29_p1, %s27_s21), 0  ;;  %p219_p3 = pnand %p2082_p0, %p218_p2 }
   0x6   : > { %p260_p4 = scmp.lt.s32.totalorder (!%p219_p3), %s2140_s18, 1 }
   0x7   : > { %222 = sbr.rel (%p219_p3) target bundleno = 715 (0x2cb), region = 40 }
   0xc   : > { %v288_v0 = vld [vmem:[%s2404_s2] sm:$0xff]  ;;  %vm302_vm0 = vcmask 80896   ;;  %v289_v1 = vld [vmem:[%s2404_s2 + $0x8] sm:$0xff]  ;;  %v2150_v2 = vmov 0.0   ;;  %s2413_s18 = smov (!%p260_p4, %s2140_s18), 1  ;;  %v2151_v7 = vmov 0  }
   0xd   : > { %384 = vmatprep.mubr.f32.mxu0 %v2150_v2  ;;  %v304_v3 = vsel %vm302_vm0, %v288_v0, 0  ;;  %v307_v4 = vsel %vm302_vm0, %v289_v1, 0  ;;  %491 = vmatprep.mubr.f32.mxu1 %v2150_v2  ;;  %s2095_s26 = sshll.u32 %s2413_s18, 5  ;;  %vm309_vm1 = vcmask 1041408   ;;  %s2096_s27 = sshll.u32 %s2413_s18, 4  ;;  %v2091_v36 = vld [vmem:[%s2406_s4 + $0x10] sm:$0xff] }
   0xe   : > { %v2210_v5 = vand.u32 4294901760, %v304_v3  ;;  %v2212_v6 = vand.u32 4294901760, %v307_v4  ;;  %2124 = vset.pattern.permute.xlu0 %v2151_v7  ;;  %2125 = vset.pattern.permute.xlu1 %v2151_v7  ;;  %s267_s30 = scalar_lea.vmem %s2402_s0, %s2095_s26  ;;  %s273_s8 = scalar_lea.vmem %s2403_s1, %s2096_s27  ;;  %v863_v45 = vld [vmem:[%s2406_s4 + $0x8] sm:$0xff]  ;;  %v862_v46 = vld [vmem:[%s2406_s4] sm:$0xff]  ;;  %vm874_vm2 = vcmask 130048  }
   0xf   : > { %v287_v10 = vld [vmem:[%s267_s30 + $0x18] sm:$0x3]  ;;  %v286_v11 = vld [vmem:[%s267_s30 + $0x10] sm:$0x3]  ;;  %v285_v12 = vld [vmem:[%s267_s30 + $0x8] sm:$0xff]  ;;  %871 = vperm.xlu1 %2125, %v863_v45   ;;  %s2097_s27 = sshll.u32 %s2413_s18, 3 }
  0x10   : > { %v2216_v8 = vsub.f32 %v304_v3, %v2210_v5  ;;  %v2219_v9 = vsub.f32 %v307_v4, %v2212_v6  ;;  %v314_v14 = vsel %vm309_vm1, %v287_v10, 0  ;;  %v311_v15 = vsel %vm309_vm1, %v286_v11, 0  ;;  %v284_v17 = vld [vmem:[%s267_s30] sm:$0xff]  ;;  %v291_v19 = vld [vmem:[%s273_s8 + $0x8] sm:$0xff]  ;;  %s282_s30 = scalar_lea.vmem %s2407_s5, %s2097_s27 }
  0x11   : > { %v2229_v16 = vand.u32 4294901760, %v285_v12  ;;  %v344_v20 = vand.u32 4294901760, %v314_v14  ;;  %v2232_v21 = vand.u32 4294901760, %v311_v15  ;;  %v2234_v22 = vand.u32 4294901760, %v284_v17  ;;  %299 = vperm.xlu0 %2124, %v291_v19   ;;  %v290_v26 = vld [vmem:[%s273_s8] sm:$0xff] }
  0x12   : > { %v387_v13 = vand.u32 4294901760, %v2216_v8  ;;  %v398_v18 = vand.u32 4294901760, %v2219_v9  ;;  %v860_v1 = vld [vmem:[%s2405_s3] sm:$0xff] }
  0x13   : > { %v448_v25 = vsub.f32 %v285_v12, %v2229_v16  ;;  %345 = vmatprep.subr.mxu0 %v344_v20  ;;  %v436_v28 = vsub.f32 %v314_v14, %v344_v20  ;;  %v442_v29 = vsub.f32 %v311_v15, %v2232_v21  ;;  %v454_v30 = vsub.f32 %v284_v17, %v2234_v22  ;;  %v861_v15 = vld [vmem:[%s2405_s3 + $0x8] sm:$0xff] }
  0x14   : > { %v388_v23 = vsub.f32 %v2216_v8, %v387_v13  ;;  %v399_v24 = vsub.f32 %v2219_v9, %v398_v18  ;;  %347 = vmatpush1.msra.mxu0 %v2232_v21  ;;  %866 = vperm.xlu1 %2125, %v862_v46  }
  0x15   : > { %v449_v31 = vand.u32 4294901760, %v448_v25  ;;  %349 = vmatprep.subr.mxu0 %v2229_v16  ;;  %v437_v32 = vand.u32 4294901760, %v436_v28  ;;  %v443_v33 = vand.u32 4294901760, %v442_v29  ;;  %v455_v34 = vand.u32 4294901760, %v454_v30  ;;  %294 = vperm.xlu0 %2124, %v290_v26  }
  0x16   : > { %v389_v27 = vand.u32 4294901760, %v388_v23  ;;  %351 = vmatpush1.msra.mxu0 %v2234_v22  ;;  %v400_v39 = vand.u32 4294901760, %v399_v24 }
  0x17   : > { %v450_v35 = vsub.f32 %v448_v25, %v449_v31  ;;  %v438_v37 = vsub.f32 %v436_v28, %v437_v32  ;;  %v444_v38 = vsub.f32 %v442_v29, %v443_v33  ;;  %536 = vmatprep.subr.mxu0 %v436_v28  ;;  %v456_v40 = vsub.f32 %v454_v30, %v455_v34 }
  0x18   : > { %390 = vmatmul.mubr.f32.vlgmr.msra.gmra.mxu0 %v389_v27 }
  0x19   : > { %395 = vmatprep.mubr.f32.mxu0 %v2150_v2  ;;  %539 = vmatpush1.msra.mxu0 %v442_v29  ;;  %v439_v41 = vand.u32 4294901760, %v438_v37  ;;  %v445_v42 = vand.u32 4294901760, %v444_v38  ;;  %v451_v43 = vand.u32 4294901760, %v450_v35  ;;  %v457_v44 = vand.u32 4294901760, %v456_v40 }
  0x1a   : > { %542 = vmatprep.subr.mxu0 %v448_v25  ;;  %1433 = vperm.xlu0 %2124, %v2091_v36  }
  0x1b   : > { %545 = vmatpush1.msra.mxu0 %v454_v30  ;;  %440 = vmatprep.subr.mxu1 %v439_v41 }
  0x1c   : > { %401 = vmatmul.mubr.f32.gmra.mxu0 %v400_v39  ;;  %446 = vmatpush1.msra.mxu1 %v445_v42 }
  0x1d   : > { %578 = vmatprep.mubr.f32.mxu0 %v2150_v2  ;;  %452 = vmatprep.subr.mxu1 %v451_v43 }
  0x1e   : > { %713 = vmatprep.subr.mxu0 %v437_v32  ;;  %458 = vmatpush1.msra.mxu1 %v457_v44 }
  0x1f   : > { %493 = vmatmul.mubr.f32.vlgmr.msra.gmra.mxu1 %v2210_v5  ;;  %624 = vmatprep.subr.mxu1 %v344_v20 }
  0x20   : > { %581 = vmatmul.mubr.f32.vlgmr.msra.gmra.mxu0 %v2216_v8  ;;  %498 = vmatprep.mubr.f32.mxu1 %v2150_v2 }
  0x21   : > { %586 = vmatprep.mubr.f32.mxu0 %v2150_v2  ;;  %626 = vmatpush1.msra.mxu1 %v2232_v21 }
  0x22   : > { %628 = vmatprep.subr.mxu1 %v2229_v16  ;;  %717 = vmatpush1.msra.mxu0 %v443_v33 }
  0x23   : > { %500 = vmatmul.mubr.f32.gmra.mxu1 %v2212_v6  ;;  %721 = vmatprep.subr.mxu0 %v449_v31 }
  0x24   : > { %589 = vmatmul.mubr.f32.gmra.mxu0 %v2219_v9  ;;  %630 = vmatpush1.msra.mxu1 %v2234_v22  ;;  %v876_v9 = vsel %vm874_vm2, %v860_v1, 0 }
  0x25   : > { %663 = vmatprep.mubr.f32.mxu1 %v2150_v2  ;;  %758 = vmatprep.mubr.f32.mxu0 %v2150_v2  ;;  %v2294_v17 = vand.u32 4294901760, %v876_v9 }
  0x26   : > { %725 = vmatpush1.msra.mxu0 %v455_v34  ;;  %802 = vmatprep.subr.mxu1 %v344_v20 }
  0x27   : > { %667 = vmatmul.mubr.f32.vlgmr.msra.gmra.mxu1 %v387_v13  ;;  %v2298_v27 = vsub.f32 %v876_v9, %v2294_v17 }
  0x28   : > { %760 = vmatmul.mubr.f32.vlgmr.msra.gmra.mxu0 %v2210_v5  ;;  %672 = vmatprep.mubr.f32.mxu1 %v2150_v2 }
  0x29   : > { %765 = vmatprep.mubr.f32.mxu0 %v2150_v2  ;;  %804 = vmatpush1.msra.mxu1 %v2232_v21  ;;  %v952_v38 = vand.u32 4294901760, %v2298_v27 }
  0x2a   : > { %806 = vmatprep.subr.mxu1 %v2229_v16 }
  0x2b   : > { %676 = vmatmul.mubr.f32.gmra.mxu1 %v398_v18 }
  0x2c   : > { %767 = vmatmul.mubr.f32.gmra.mxu0 %v2212_v6  ;;  %808 = vmatpush1.msra.mxu1 %v2234_v22  ;;  %v879_v22 = vsel %vm874_vm2, %v861_v15, 0 }
  0x2d   : > { %841 = vmatprep.mubr.f32.mxu1 %v2150_v2  ;;  %949 = vmatprep.mubr.f32.mxu0 %v2150_v2  ;;  %v2300_v31 = vand.u32 4294901760, %v879_v22 }
  0x2f   : > { %843 = vmatmul.mubr.f32.vlgmr.msra.gmra.mxu1 %v2210_v5  ;;  %v2304_v42 = vsub.f32 %v879_v22, %v2300_v31 }
  0x30   : > { %848 = vmatprep.mubr.f32.mxu1 %v2150_v2 }
  0x33   : > { %850 = vmatmul.mubr.f32.gmra.mxu1 %v2212_v6 }
  0x34   : > { %1056 = vmatprep.mubr.f32.mxu1 %v2150_v2 }
  0x8c   : > { %v300_v47 = vpop.permute.xlu0 %299 }
  0x90   : > { %v295_v51 = vpop.permute.xlu0 %294 }
  0xd8   : > { %v391_v48 = vpop.f32.mrf.mxu0 }
  0xd9   : > { %v392_v55 = vadd.f32 %v391_v48, %v295_v51  ;;  %v953_v48 = vsub.f32 %v2298_v27, %v952_v38 }
  0xda   : > { %v393_v49 = vpop.f32.mrf.mxu0 }
  0xdb   : > { %v394_v60 = vadd.f32 %v393_v49, %v295_v51 }
  0xdc   : > { %v402_v50 = vpop.f32.mrf.mxu0 }
  0xdd   : > { %v403_v61 = vadd.f32 %v402_v50, %v300_v47 }
  0xde   : > { %v404_v52 = vpop.f32.mrf.mxu0 }
  0xdf   : > { %v494_v53 = vpop.f32.mrf.mxu1  ;;  %v405_v6 = vadd.f32 %v404_v52, %v300_v47  ;;  %v963_v52 = vand.u32 4294901760, %v2304_v42 }
  0xe0   : > { %v582_v54 = vpop.f32.mrf.mxu0  ;;  %v495_v62 = vadd.f32 %v494_v53, %v392_v55 }
  0xe1   : > { %v496_v56 = vpop.f32.mrf.mxu1 }
  0xe2   : > { %v584_v57 = vpop.f32.mrf.mxu0  ;;  %v497_v3 = vadd.f32 %v496_v56, %v394_v60  ;;  %v583_v7 = vadd.f32 %v582_v54, %v495_v62  ;;  %v954_v56 = vand.u32 4294901760, %v953_v48 }
  0xe3   : > { %v501_v58 = vpop.f32.mrf.mxu1 }
  0xe4   : > { %v590_v59 = vpop.f32.mrf.mxu0  ;;  %v502_v8 = vadd.f32 %v501_v58, %v403_v61  ;;  %v585_v12 = vadd.f32 %v584_v57, %v497_v3 }
  0xe5   : > { %v503_v63 = vpop.f32.mrf.mxu1 }
  0xe6   : > { %v592_v0 = vpop.f32.mrf.mxu0  ;;  %v504_v13 = vadd.f32 %v503_v63, %v405_v6  ;;  %v591_v18 = vadd.f32 %v590_v59, %v502_v8  ;;  %v964_v59 = vsub.f32 %v2304_v42, %v963_v52 }
  0xe7   : > { %v668_v4 = vpop.f32.mrf.mxu1 }
  0xe8   : > { %v761_v5 = vpop.f32.mrf.mxu0  ;;  %v669_v14 = vadd.f32 %v668_v4, %v583_v7  ;;  %v593_v23 = vadd.f32 %v592_v0, %v504_v13  ;;  %v965_v0 = vand.u32 4294901760, %v964_v59 }
  0xe9   : > { %v670_v10 = vpop.f32.mrf.mxu1 }
  0xea   : > { %v763_v11 = vpop.f32.mrf.mxu0  ;;  %v671_v19 = vadd.f32 %v670_v10, %v585_v12  ;;  %v762_v24 = vadd.f32 %v761_v5, %v669_v14  ;;  %v872_v10 = vpop.permute.xlu1 %871 }
  0xeb   : > { %v677_v16 = vpop.f32.mrf.mxu1 }
  0xec   : > { %v768_v21 = vpop.f32.mrf.mxu0  ;;  %v678_v25 = vadd.f32 %v677_v16, %v591_v18  ;;  %v764_v28 = vadd.f32 %v763_v11, %v671_v19 }
  0xed   : > { %v679_v20 = vpop.f32.mrf.mxu1 }
  0xee   : > { %v680_v29 = vadd.f32 %v679_v20, %v593_v23  ;;  %v770_v32 = vpop.f32.mrf.mxu0  ;;  %v769_v34 = vadd.f32 %v768_v21, %v678_v25  ;;  %v867_v14 = vpop.permute.xlu1 %866 }
  0xef   : > { %v844_v26 = vpop.f32.mrf.mxu1 }
  0xf0   : > { %v845_v30 = vadd.f32 %v844_v26, %v762_v24  ;;  %v771_v39 = vadd.f32 %v770_v32, %v680_v29  ;;  %v2089_v26 = vld [vmem:[%s2405_s3 + $0x10] sm:$0xff] }
  0xf1   : > { %v846_v33 = vpop.f32.mrf.mxu1 }
  0xf2   : > { %v856_v35 = vmax.f32 %v845_v30, 0.0  ;;  %v847_v36 = vadd.f32 %v846_v33, %v764_v28  ;;  %v1441_v33 = vsel %vm874_vm2, %v2089_v26, 0 }
  0xf3   : > { %v851_v37 = vpop.f32.mrf.mxu1 }
  0xf4   : > { %v857_v40 = vmax.f32 %v847_v36, 0.0  ;;  %v852_v41 = vadd.f32 %v851_v37, %v769_v34  ;;  %v2306_v43 = vand.u32 4294901760, %v856_v35 }
  0xf5   : > { %v853_v44 = vpop.f32.mrf.mxu1 }
  0xf6   : > { %v913_v45 = vand.u32 4294901760, %v857_v40  ;;  %v858_v46 = vmax.f32 %v852_v41, 0.0  ;;  %v854_v47 = vadd.f32 %v853_v44, %v771_v39  ;;  %v1019_v53 = vsub.f32 %v856_v35, %v2306_v43  ;;  %v2090_v39 = vld [vmem:[%s2405_s3 + $0x18] sm:$0xff] }
  0xf8   : > { %v1013_v49 = vsub.f32 %v857_v40, %v913_v45  ;;  %v911_v50 = vand.u32 4294901760, %v858_v46  ;;  %v859_v51 = vmax.f32 %v854_v47, 0.0  ;;  %v1020_v61 = vand.u32 4294901760, %v1019_v53 }
  0xf9   : > { %v1444_v47 = vsel %vm874_vm2, %v2090_v39, 0 }
  0xfa   : > { %v1007_v54 = vsub.f32 %v858_v46, %v911_v50  ;;  %v909_v55 = vand.u32 4294901760, %v859_v51  ;;  %v1014_v60 = vand.u32 4294901760, %v1013_v49  ;;  %v1021_v4 = vsub.f32 %v1019_v53, %v1020_v61 }
  0xfc   : > { %v1008_v57 = vand.u32 4294901760, %v1007_v54  ;;  %v1001_v58 = vsub.f32 %v859_v51, %v909_v55  ;;  %910 = vmatprep.subr.mxu0 %v909_v55  ;;  %v1015_v3 = vsub.f32 %v1013_v49, %v1014_v60  ;;  %v1022_v8 = vand.u32 4294901760, %v1021_v4 }
  0xfd   : > { %912 = vmatpush1.msra.mxu0 %v911_v50 }
  0xfe   : > { %914 = vmatprep.subr.mxu0 %v913_v45  ;;  %v1002_v62 = vand.u32 4294901760, %v1001_v58  ;;  %v1009_v63 = vsub.f32 %v1007_v54, %v1008_v57  ;;  %v1016_v7 = vand.u32 4294901760, %v1015_v3 }
  0xff   : > { %916 = vmatpush1.msra.mxu0 %v2306_v43 }
 0x100   : > { %955 = vmatmul.mubr.f32.vlgmr.msra.gmra.mxu0 %v954_v56  ;;  %1101 = vmatprep.subr.mxu0 %v1001_v58  ;;  %v1003_v1 = vsub.f32 %v1001_v58, %v1002_v62  ;;  %v1010_v6 = vand.u32 4294901760, %v1009_v63  ;;  %v2352_v56 = vand.u32 4294901760, %v1444_v47 }
 0x101   : > { %1104 = vmatpush1.msra.mxu0 %v1007_v54  ;;  %960 = vmatprep.mubr.f32.mxu0 %v2150_v2 }
 0x102   : > { %1107 = vmatprep.subr.mxu0 %v1013_v49  ;;  %v1004_v5 = vand.u32 4294901760, %v1003_v1  ;;  %v2356_v4 = vsub.f32 %v1444_v47, %v2352_v56 }
 0x103   : > { %1110 = vmatpush1.msra.mxu0 %v1019_v53 }
 0x104   : > { %966 = vmatmul.mubr.f32.gmra.mxu0 %v965_v0  ;;  %1005 = vmatprep.subr.mxu1 %v1004_v5 }
 0x105   : > { %1278 = vmatprep.subr.mxu0 %v1002_v62  ;;  %1011 = vmatpush1.msra.mxu1 %v1010_v6 }
 0x106   : > { %1017 = vmatprep.subr.mxu1 %v1016_v7  ;;  %1143 = vmatprep.mubr.f32.mxu0 %v2150_v2 }
 0x107   : > { %1023 = vmatpush1.msra.mxu1 %v1022_v8 }
 0x108   : > { %1058 = vmatmul.mubr.f32.vlgmr.msra.gmra.mxu1 %v2294_v17  ;;  %1146 = vmatmul.mubr.f32.vlgmr.msra.gmra.mxu0 %v2298_v27 }
 0x109   : > { %1189 = vmatprep.subr.mxu1 %v909_v55  ;;  %1282 = vmatpush1.msra.mxu0 %v1008_v57 }
 0x10a   : > { %1191 = vmatpush1.msra.mxu1 %v911_v50  ;;  %1286 = vmatprep.subr.mxu0 %v1014_v60 }
 0x10b   : > { %1193 = vmatprep.subr.mxu1 %v913_v45  ;;  %1290 = vmatpush1.msra.mxu0 %v1020_v61 }
 0x10c   : > { %1063 = vmatprep.mubr.f32.mxu1 %v2150_v2  ;;  %1195 = vmatpush1.msra.mxu1 %v2306_v43 }
 0x10d   : > { %1065 = vmatmul.mubr.f32.gmra.mxu1 %v2300_v31  ;;  %1367 = vmatprep.subr.mxu1 %v909_v55 }
 0x10e   : > { %1151 = vmatprep.mubr.f32.mxu0 %v2150_v2  ;;  %1228 = vmatprep.mubr.f32.mxu1 %v2150_v2 }
 0x10f   : > { %1154 = vmatmul.mubr.f32.gmra.mxu0 %v2304_v42  ;;  %v2346_v42 = vand.u32 4294901760, %v1441_v33 }
 0x110   : > { %1323 = vmatprep.mubr.f32.mxu0 %v2150_v2 }
 0x111   : > { %1232 = vmatmul.mubr.f32.vlgmr.msra.gmra.mxu1 %v952_v38 }
 0x112   : > { %1369 = vmatpush1.msra.mxu1 %v911_v50  ;;  %1237 = vmatprep.mubr.f32.mxu1 %v2150_v2 }
 0x113   : > { %1371 = vmatprep.subr.mxu1 %v913_v45  ;;  %1325 = vmatmul.mubr.f32.vlgmr.msra.gmra.mxu0 %v2294_v17 }
 0x114   : > { %1373 = vmatpush1.msra.mxu1 %v2306_v43  ;;  %1330 = vmatprep.mubr.f32.mxu0 %v2150_v2 }
 0x115   : > { %1241 = vmatmul.mubr.f32.gmra.mxu1 %v963_v52  ;;  %v2350_v52 = vsub.f32 %v1441_v33, %v2346_v42 }
 0x116   : > { %1406 = vmatprep.mubr.f32.mxu1 %v2150_v2 }
 0x117   : > { %1332 = vmatmul.mubr.f32.gmra.mxu0 %v2300_v31  ;;  %v1517_v63 = vand.u32 4294901760, %v2350_v52 }
 0x118   : > { %1514 = vmatprep.mubr.f32.mxu0 %v2150_v2 }
 0x119   : > { %1408 = vmatmul.mubr.f32.vlgmr.msra.gmra.mxu1 %v2294_v17 }
 0x11a   : > { %1413 = vmatprep.mubr.f32.mxu1 %v2150_v2 }
 0x11d   : > { %1415 = vmatmul.mubr.f32.gmra.mxu1 %v2300_v31 }
 0x11e   : > { %1619 = vmatprep.mubr.f32.mxu1 %v2150_v2 }
 0x1c0   : > { %v956_v9 = vpop.f32.mrf.mxu0 }
 0x1c1   : > { %v957_v18 = vadd.f32 %v956_v9, %v867_v14 }
 0x1c2   : > { %v958_v11 = vpop.f32.mrf.mxu0 }
 0x1c3   : > { %v959_v22 = vadd.f32 %v958_v11, %v867_v14  ;;  %v1528_v14 = vand.u32 4294901760, %v2356_v4 }
 0x1c4   : > { %v967_v12 = vpop.f32.mrf.mxu0 }
 0x1c5   : > { %v968_v17 = vadd.f32 %v967_v12, %v872_v10 }
 0x1c6   : > { %v969_v13 = vpop.f32.mrf.mxu0 }
 0x1c7   : > { %v970_v30 = vadd.f32 %v969_v13, %v872_v10  ;;  %v1518_v10 = vsub.f32 %v2350_v52, %v1517_v63 }
 0x1c8   : > { %v1059_v15 = vpop.f32.mrf.mxu1  ;;  %v1147_v16 = vpop.f32.mrf.mxu0 }
 0x1c9   : > { %v1060_v23 = vadd.f32 %v1059_v15, %v957_v18 }
 0x1ca   : > { %v1061_v19 = vpop.f32.mrf.mxu1  ;;  %v1149_v20 = vpop.f32.mrf.mxu0 }
 0x1cb   : > { %v1062_v27 = vadd.f32 %v1061_v19, %v959_v22  ;;  %v1148_v31 = vadd.f32 %v1147_v16, %v1060_v23  ;;  %v1519_v19 = vand.u32 4294901760, %v1518_v10  ;;  %v1529_v22 = vsub.f32 %v2356_v4, %v1528_v14 }
 0x1cd   : > { %v1066_v21 = vpop.f32.mrf.mxu1  ;;  %v1150_v36 = vadd.f32 %v1149_v20, %v1062_v27  ;;  %v1530_v26 = vand.u32 4294901760, %v1529_v22 }
 0x1ce   : > { %v1067_v32 = vadd.f32 %v1066_v21, %v968_v17 }
 0x1cf   : > { %v1068_v24 = vpop.f32.mrf.mxu1  ;;  %v1155_v25 = vpop.f32.mrf.mxu0 }
 0x1d0   : > { %v1069_v37 = vadd.f32 %v1068_v24, %v970_v30  ;;  %v1156_v43 = vadd.f32 %v1155_v25, %v1067_v32 }
 0x1d1   : > { %v1157_v28 = vpop.f32.mrf.mxu0  ;;  %v1233_v29 = vpop.f32.mrf.mxu1 }
 0x1d2   : > { %v1234_v38 = vadd.f32 %v1233_v29, %v1148_v31  ;;  %v1158_v48 = vadd.f32 %v1157_v28, %v1069_v37 }
 0x1d3   : > { %v1235_v34 = vpop.f32.mrf.mxu1  ;;  %v1326_v35 = vpop.f32.mrf.mxu0 }
 0x1d4   : > { %v1236_v44 = vadd.f32 %v1235_v34, %v1150_v36  ;;  %v1327_v49 = vadd.f32 %v1326_v35, %v1234_v38 }
 0x1d5   : > { %v1242_v40 = vpop.f32.mrf.mxu1  ;;  %v1328_v41 = vpop.f32.mrf.mxu0 }
 0x1d6   : > { %v1243_v50 = vadd.f32 %v1242_v40, %v1156_v43  ;;  %v1329_v53 = vadd.f32 %v1328_v41, %v1236_v44  ;;  %v1434_v43 = vpop.permute.xlu0 %1433 }
 0x1d7   : > { %v1244_v45 = vpop.f32.mrf.mxu1  ;;  %v1333_v46 = vpop.f32.mrf.mxu0 }
 0x1d8   : > { %v1245_v54 = vadd.f32 %v1244_v45, %v1158_v48  ;;  %v1334_v59 = vadd.f32 %v1333_v46, %v1243_v50 }
 0x1d9   : > { %v1409_v51 = vpop.f32.mrf.mxu1  ;;  %v1335_v57 = vpop.f32.mrf.mxu0 }
 0x1da   : > { %v1410_v55 = vadd.f32 %v1409_v51, %v1327_v49  ;;  %v1336_v0 = vadd.f32 %v1335_v57, %v1245_v54 }
 0x1db   : > { %v1411_v58 = vpop.f32.mrf.mxu1 }
 0x1dc   : > { %v1421_v60 = vmax.f32 %v1410_v55, 0.0  ;;  %v1412_v61 = vadd.f32 %v1411_v58, %v1329_v53 }
 0x1dd   : > { %v1416_v62 = vpop.f32.mrf.mxu1 }
 0x1de   : > { %v1422_v1 = vmax.f32 %v1412_v61, 0.0  ;;  %v1417_v3 = vadd.f32 %v1416_v62, %v1334_v59  ;;  %v2358_v5 = vand.u32 4294901760, %v1421_v60 }
 0x1df   : > { %v1418_v6 = vpop.f32.mrf.mxu1 }
 0x1e0   : > { %v1478_v7 = vand.u32 4294901760, %v1422_v1  ;;  %v1423_v8 = vmax.f32 %v1417_v3, 0.0  ;;  %v1419_v9 = vadd.f32 %v1418_v6, %v1336_v0  ;;  %v1582_v15 = vsub.f32 %v1421_v60, %v2358_v5 }
 0x1e2   : > { %v1576_v11 = vsub.f32 %v1422_v1, %v1478_v7  ;;  %v1476_v12 = vand.u32 4294901760, %v1423_v8  ;;  %v1424_v13 = vmax.f32 %v1419_v9, 0.0  ;;  %v1583_v23 = vand.u32 4294901760, %v1582_v15 }
 0x1e4   : > { %v1570_v16 = vsub.f32 %v1423_v8, %v1476_v12  ;;  %v1474_v18 = vand.u32 4294901760, %v1424_v13  ;;  %v1577_v17 = vand.u32 4294901760, %v1576_v11  ;;  %v1584_v29 = vsub.f32 %v1582_v15, %v1583_v23 }
 0x1e6   : > { %v1571_v20 = vand.u32 4294901760, %v1570_v16  ;;  %v1564_v21 = vsub.f32 %v1424_v13, %v1474_v18  ;;  %1475 = vmatprep.subr.mxu0 %v1474_v18  ;;  %v1578_v28 = vsub.f32 %v1576_v11, %v1577_v17  ;;  %v1585_v33 = vand.u32 4294901760, %v1584_v29 }
 0x1e7   : > { %1477 = vmatpush1.msra.mxu0 %v1476_v12 }
 0x1e8   : > { %1479 = vmatprep.subr.mxu0 %v1478_v7  ;;  %v1565_v24 = vand.u32 4294901760, %v1564_v21  ;;  %v1572_v25 = vsub.f32 %v1570_v16, %v1571_v20  ;;  %v1579_v32 = vand.u32 4294901760, %v1578_v28 }
 0x1e9   : > { %1481 = vmatpush1.msra.mxu0 %v2358_v5 }
 0x1ea   : > { %1520 = vmatmul.mubr.f32.vlgmr.msra.gmra.mxu0 %v1519_v19  ;;  %1662 = vmatprep.subr.mxu0 %v1564_v21  ;;  %v1566_v27 = vsub.f32 %v1564_v21, %v1565_v24  ;;  %v1573_v31 = vand.u32 4294901760, %v1572_v25 }
 0x1eb   : > { %1665 = vmatpush1.msra.mxu0 %v1570_v16  ;;  %1525 = vmatprep.mubr.f32.mxu0 %v2150_v2 }
 0x1ec   : > { %1668 = vmatprep.subr.mxu0 %v1576_v11  ;;  %v1567_v30 = vand.u32 4294901760, %v1566_v27 }
 0x1ed   : > { %1671 = vmatpush1.msra.mxu0 %v1582_v15 }
 0x1ee   : > { %1531 = vmatmul.mubr.f32.gmra.mxu0 %v1530_v26  ;;  %1568 = vmatprep.subr.mxu1 %v1567_v30 }
 0x1ef   : > { %1835 = vmatprep.subr.mxu0 %v1565_v24  ;;  %1574 = vmatpush1.msra.mxu1 %v1573_v31 }
 0x1f0   : > { %1580 = vmatprep.subr.mxu1 %v1579_v32  ;;  %1704 = vmatprep.mubr.f32.mxu0 %v2150_v2 }
 0x1f1   : > { %1586 = vmatpush1.msra.mxu1 %v1585_v33 }
 0x1f2   : > { %1621 = vmatmul.mubr.f32.vlgmr.msra.gmra.mxu1 %v2346_v42  ;;  %1707 = vmatmul.mubr.f32.vlgmr.msra.gmra.mxu0 %v2350_v52 }
 0x1f3   : > { %1748 = vmatprep.subr.mxu1 %v1474_v18  ;;  %1839 = vmatpush1.msra.mxu0 %v1571_v20 }
 0x1f4   : > { %1750 = vmatpush1.msra.mxu1 %v1476_v12  ;;  %1843 = vmatprep.subr.mxu0 %v1577_v17 }
 0x1f5   : > { %1752 = vmatprep.subr.mxu1 %v1478_v7  ;;  %1847 = vmatpush1.msra.mxu0 %v1583_v23 }
 0x1f6   : > { %1626 = vmatprep.mubr.f32.mxu1 %v2150_v2  ;;  %1754 = vmatpush1.msra.mxu1 %v2358_v5 }
 0x1f7   : > { %1628 = vmatmul.mubr.f32.gmra.mxu1 %v2352_v56  ;;  %1922 = vmatprep.subr.mxu1 %v1474_v18 }
 0x1f8   : > { %1712 = vmatprep.mubr.f32.mxu0 %v2150_v2  ;;  %1787 = vmatprep.mubr.f32.mxu1 %v2150_v2 }
 0x1f9   : > { %1715 = vmatmul.mubr.f32.gmra.mxu0 %v2356_v4 }
 0x1fa   : > { %1880 = vmatprep.mubr.f32.mxu0 %v2150_v2 }
 0x1fb   : > { %1791 = vmatmul.mubr.f32.vlgmr.msra.gmra.mxu1 %v1517_v63 }
 0x1fc   : > { %1924 = vmatpush1.msra.mxu1 %v1476_v12  ;;  %1796 = vmatprep.mubr.f32.mxu1 %v2150_v2 }
 0x1fd   : > { %1926 = vmatprep.subr.mxu1 %v1478_v7  ;;  %1882 = vmatmul.mubr.f32.vlgmr.msra.gmra.mxu0 %v2346_v42 }
 0x1fe   : > { %1928 = vmatpush1.msra.mxu1 %v2358_v5  ;;  %1887 = vmatprep.mubr.f32.mxu0 %v2150_v2 }
 0x1ff   : > { %1800 = vmatmul.mubr.f32.gmra.mxu1 %v1528_v14 }
 0x200   : > { %1961 = vmatprep.mubr.f32.mxu1 %v2150_v2 }
 0x201   : > { %1889 = vmatmul.mubr.f32.gmra.mxu0 %v2352_v56 }
 0x203   : > { %1963 = vmatmul.mubr.f32.vlgmr.msra.gmra.mxu1 %v2346_v42 }
 0x204   : > { %1968 = vmatprep.mubr.f32.mxu1 %v2150_v2 }
 0x207   : > { %1970 = vmatmul.mubr.f32.gmra.mxu1 %v2352_v56 }
 0x2aa   : > { %v1521_v34 = vpop.f32.mrf.mxu0 }
 0x2ab   : > { %v1522_v45 = vadd.f32 %v1521_v34, %v1434_v43 }
 0x2ac   : > { %v1523_v35 = vpop.f32.mrf.mxu0 }
 0x2ad   : > { %v1524_v46 = vadd.f32 %v1523_v35, %v1434_v43 }
 0x2ae   : > { %v1532_v36 = vpop.f32.mrf.mxu0 }
 0x2b0   : > { %v1533_v37 = vpop.f32.mrf.mxu0 }
 0x2b2   : > { %v1622_v38 = vpop.f32.mrf.mxu1  ;;  %v1708_v39 = vpop.f32.mrf.mxu0 }
 0x2b3   : > { %v1623_v49 = vadd.f32 %v1622_v38, %v1522_v45 }
 0x2b4   : > { %v1624_v40 = vpop.f32.mrf.mxu1  ;;  %v1710_v41 = vpop.f32.mrf.mxu0 }
 0x2b5   : > { %v1625_v42 = vadd.f32 %v1624_v40, %v1524_v46  ;;  %v1709_v53 = vadd.f32 %v1708_v39, %v1623_v49 }
 0x2b7   : > { %v1629_v44 = vpop.f32.mrf.mxu1  ;;  %v1711_v54 = vadd.f32 %v1710_v41, %v1625_v42 }
 0x2b9   : > { %v1630_v47 = vpop.f32.mrf.mxu1  ;;  %v1716_v48 = vpop.f32.mrf.mxu0 }
 0x2bb   : > { %v1717_v50 = vpop.f32.mrf.mxu0  ;;  %v1792_v2 = vpop.f32.mrf.mxu1 }
 0x2bc   : > { %v1793_v57 = vadd.f32 %v1792_v2, %v1709_v53 }
 0x2bd   : > { %v1794_v51 = vpop.f32.mrf.mxu1  ;;  %v1883_v52 = vpop.f32.mrf.mxu0 }
 0x2be   : > { %v1795_v58 = vadd.f32 %v1794_v51, %v1711_v54  ;;  %v1884_v63 = vadd.f32 %v1883_v52, %v1793_v57 }
 0x2bf   : > { %v1801_v55 = vpop.f32.mrf.mxu1  ;;  %v1885_v56 = vpop.f32.mrf.mxu0 }
 0x2c0   : > { %v1886_v0 = vadd.f32 %v1885_v56, %v1795_v58 }
 0x2c1   : > { %v1802_v59 = vpop.f32.mrf.mxu1  ;;  %v1890_v60 = vpop.f32.mrf.mxu0 }
 0x2c3   : > { %v1964_v61 = vpop.f32.mrf.mxu1  ;;  %v1891_v62 = vpop.f32.mrf.mxu0 }
 0x2c4   : > { %v1965_v3 = vadd.f32 %v1964_v61, %v1884_v63 }
 0x2c5   : > { %v1966_v1 = vpop.f32.mrf.mxu1 }
 0x2c6   : > { %v1967_v4 = vadd.f32 %v1966_v1, %v1886_v0 }
 0x2c7   : > { %v1971_v5 = vpop.f32.mrf.mxu1 }
 0x2c8   : > { %v1976_v6 = vcombine.low %v1965_v3, %v1967_v4 }
 0x2c9   : > { %v1972_v7 = vpop.f32.mrf.mxu1 }
 0x2ca   : > { %1978 = vst [vmem:[%s282_s30] sm:$0xff] %v1976_v6 }
 0x2cb PF: > { %s15_s20 = sadd.s32 1, %s2148_s20   ;;  %s2408_s18 = smov %s2144_s19 }
 0x2cc   : > { %p12_p5 = scmp.ge.s32.totalorder %s15_s20, 4   ;;  %s2409_s19 = smov %s2411_s21 }
 0x2ce   :  { %14 = sbr.rel (!%p12_p5) target bundleno = 2 (0x2), region = 75 }

</bundles_post_ra>
